<compile_context>
chip_gen: v7x
topology: tpu7x:2x2x1
jax: 0.10.0
libtpu: 0.0.40
codegen_flags: <defaults>
</compile_context>

<pallas_src>
import functools

import jax
import jax.numpy as jnp
from jax.experimental import pallas as pl
from jax.experimental.pallas import tpu as pltpu

LN_EPS = 1e-5

# Column indices inside the packed per-feature parameter array.
_COL_B1, _COL_G1, _COL_BE1 = 0, 1, 2
_COL_B2, _COL_G2, _COL_BE2 = 3, 4, 5
_COL_BA, _COL_W3, _COL_B3 = 6, 7, 8
_NVEC = 16  # padded number of packed columns


def _layernorm_features(x, gamma, beta, nfeat):
    """LayerNorm over the feature axis (axis 0) of an (H, TB) tile.
    Single-pass statistics (var = E[x^2] - mean^2), biased variance, eps=1e-5.
    All math in f32."""
    inv_n = 1.0 / float(nfeat)
    s = jnp.sum(x, axis=0, keepdims=True)
    ss = jnp.sum(x * x, axis=0, keepdims=True)
    mean = s * inv_n
    var = jnp.maximum(ss * inv_n - mean * mean, 0.0)
    inv = jax.lax.rsqrt(var + LN_EPS)
    return (x - mean) * inv * gamma + beta


def critic_kernel(hidden1, hidden2,
                  state_ref, action_ref,
                  wbd_ref, w2_ref, p_ref,
                  out_ref, x_ref):
    H1, H2 = hidden1, hidden2
    sdim = state_ref.shape[1]
    adim = action_ref.shape[1]

    # Static slices of the packed per-feature parameters (f32 columns).
    b1 = p_ref[:H1, _COL_B1:_COL_B1 + 1]      # (H1, 1)
    g1 = p_ref[:H1, _COL_G1:_COL_G1 + 1]
    be1 = p_ref[:H1, _COL_BE1:_COL_BE1 + 1]
    b2 = p_ref[:H2, _COL_B2:_COL_B2 + 1]      # (H2, 1)
    g2 = p_ref[:H2, _COL_G2:_COL_G2 + 1]
    be2 = p_ref[:H2, _COL_BE2:_COL_BE2 + 1]
    ba = p_ref[:H2, _COL_BA:_COL_BA + 1]
    w3c = p_ref[:H2, _COL_W3:_COL_W3 + 1]     # fc3 weight as a column (H2, 1)
    b3 = p_ref[0:1, _COL_B3:_COL_B3 + 1]      # (1, 1) scalar

    # Pack [state | action] side-by-side into one bf16 tile (fused operand).
    x_ref[:, :sdim] = state_ref[...].astype(jnp.bfloat16)
    x_ref[:, sdim:sdim + adim] = action_ref[...].astype(jnp.bfloat16)

    # One MXU pass for fc1 + action_value (block-diagonal weight), contracting
    # the feature dims -> feature-major (H1+H2, TB) in f32.
    h_all = jax.lax.dot_general(
        wbd_ref[...], x_ref[...],
        dimension_numbers=(((1,), (1,)), ((), ())),
        preferred_element_type=jnp.float32)

    # fc1 branch: bias -> LayerNorm -> ReLU
    h = h_all[:H1, :] + b1
    h = _layernorm_features(h, g1, be1, H1)
    h = jnp.maximum(h, 0.0)

    # action branch: bias -> ReLU
    a = jnp.maximum(h_all[H1:H1 + H2, :] + ba, 0.0)

    # fc2: bf16 matmul (f32 accumulate) -> bias -> LayerNorm
    h2 = jax.lax.dot_general(
        w2_ref[...], h.astype(jnp.bfloat16),
        dimension_numbers=(((1,), (0,)), ((), ())),
        preferred_element_type=jnp.float32) + b2
    h2 = _layernorm_features(h2, g2, be2, H2)

    # merge -> ReLU -> fc3 as VPU multiply + sublane reduction (off the MXU)
    sav = jnp.maximum(h2 + a, 0.0)                       # (H2, TB)
    q = jnp.sum(sav * w3c, axis=0, keepdims=True) + b3   # (1, TB), lane-dense

    out_ref[...] = q.astype(out_ref.dtype)


def _streamed_spec(shape, index_map, ntiles):
    """BlockSpec for a batch-streamed operand; requests 3-deep buffering when
    the grid is long enough to benefit (hides DMA issue latency)."""
    if ntiles >= 3 and hasattr(pl, "Buffered"):
        try:
            return pl.BlockSpec(shape, index_map, pipeline_mode=pl.Buffered(3))
        except TypeError:
            pass  # BlockSpec without pipeline_mode kwarg; use default buffering
    return pl.BlockSpec(shape, index_map)


def critic_forward(state, action, kp, *, batch_tile=2048):
    """Critic forward as a single Pallas kernel.

    state: (B, sdim) f32, action: (B, adim) f32 -> (B, 1) f32.
    kp: packed kernel params from pack_params().
    """
    B, sdim = state.shape
    adim = action.shape[1]
    H2, H1 = kp["w2"].shape
    hmax, nvec = kp["pvec"].shape
    assert kp["wbd"].shape == (H1 + H2, sdim + adim)

    # ---- batch-tile selection -------------------------------------------
    batch_tile = max(128, (batch_tile // 128) * 128)
    if B < 1024:
        # One full block: no per-step overhead (single TensorCore anyway on
        # v5e/v6e; not enough work to split on v7x).
        TB, ntiles = B, 1
    else:
        # At least 2 tiles so dimension_semantics=("parallel",) can shard the
        # batch across both TensorCores on v7x; cap the tile at batch_tile.
        ntiles = max(2, pl.cdiv(B, batch_tile))
        TB = ((pl.cdiv(B, ntiles) + 127) // 128) * 128
        ntiles = pl.cdiv(B, TB)
        # No padding of the inputs: the last (ragged) tile uses Pallas masked
        # boundary blocks -- undefined tail reads stay in their own batch
        # columns and the corresponding output lanes are discarded.

    kernel = functools.partial(critic_kernel, H1, H2)

    out = pl.pallas_call(
        kernel,
        out_shape=jax.ShapeDtypeStruct((1, B), jnp.float32),
        grid=(ntiles,),
        in_specs=[
            _streamed_spec((TB, sdim), lambda i: (i, 0), ntiles),    # state
            _streamed_spec((TB, adim), lambda i: (i, 0), ntiles),    # action
            pl.BlockSpec((H1 + H2, sdim + adim), lambda i: (0, 0)),  # Wbd (resident)
            pl.BlockSpec((H2, H1), lambda i: (0, 0)),                # w2  (resident)
            pl.BlockSpec((hmax, nvec), lambda i: (0, 0)),            # packed vectors
        ],
        out_specs=pl.BlockSpec((1, TB), lambda i: (0, i)),
        scratch_shapes=[pltpu.VMEM((TB, sdim + adim), jnp.bfloat16)],
        compiler_params=pltpu.CompilerParams(
            dimension_semantics=("parallel",)),
    )(state, action, kp["wbd"], kp["w2"], kp["pvec"])

    # Lane-dense (1, B) row -> (B, 1); trivial relabel, no data movement.
    return out.reshape(B, 1)


def init_params(key, sdim, adim, hidden1, hidden2):
    """Deterministic parameter init mirroring the PyTorch __init__ bounds.
    Stored in 'natural' (in, out) layout for the pure-JAX reference."""
    ks = jax.random.split(key, 8)

    def unif(k, shape, bound):
        return jax.random.uniform(k, shape, jnp.float32, -bound, bound)

    # fc1: uniform(-f1, f1) with f1 = 1/sqrt(weight.size(0)) = 1/sqrt(hidden1)
    f1 = 1.0 / jnp.sqrt(jnp.float32(hidden1))
    w1 = unif(ks[0], (sdim, hidden1), f1)
    b1 = unif(ks[1], (1, hidden1), f1)

    # fc2: declared Linear(hidden1+adim, hidden2); f2 = 1/sqrt(hidden2).
    # Only the first hidden1 input columns are usable (see TODO at top).
    f2 = 1.0 / jnp.sqrt(jnp.float32(hidden2))
    w2_full = unif(ks[2], (hidden1 + adim, hidden2), f2)
    w2 = w2_full[:hidden1, :]
    b2 = unif(ks[3], (1, hidden2), f2)

    # action_value: default PyTorch Linear init: uniform(-1/sqrt(in), 1/sqrt(in))
    fa = 1.0 / jnp.sqrt(jnp.float32(adim))
    wa = unif(ks[4], (adim, hidden2), fa)
    ba = unif(ks[5], (1, hidden2), fa)

    # fc3: uniform(-0.003, 0.003)
    f3 = 0.003
    w3 = unif(ks[6], (hidden2, 1), f3)
    b3 = unif(ks[7], (1, 1), f3)

    # LayerNorm params: default ones / zeros
    g1 = jnp.ones((1, hidden1), jnp.float32)
    be1 = jnp.zeros((1, hidden1), jnp.float32)
    g2 = jnp.ones((1, hidden2), jnp.float32)
    be2 = jnp.zeros((1, hidden2), jnp.float32)

    return dict(w1=w1, b1=b1, g1=g1, be1=be1,
                w2=w2, b2=b2, g2=g2, be2=be2,
                wa=wa, ba=ba, w3=w3, b3=b3)


def pack_params(p):
    """Convert natural-layout params to the kernel's packed form:
      * wbd: block-diagonal [[w1^T, 0], [0, wa^T]] in bf16 (one fused matmul
        for fc1 + action_value),
      * w2:  fc2 weight transposed to (out, in), bf16,
      * pvec: all per-feature vectors + b3 packed into one (Hmax, 16) f32
        array (one DMA instead of nine)."""
    sdim, H1 = p["w1"].shape
    adim = p["wa"].shape[0]
    H2 = p["w2"].shape[1]
    hmax = max(H1, H2)

    wbd = jnp.zeros((H1 + H2, sdim + adim), jnp.float32)
    wbd = wbd.at[:H1, :sdim].set(p["w1"].T)
    wbd = wbd.at[H1:, sdim:].set(p["wa"].T)

    pvec = jnp.zeros((hmax, _NVEC), jnp.float32)
    pvec = pvec.at[:H1, _COL_B1].set(p["b1"][0])
    pvec = pvec.at[:H1, _COL_G1].set(p["g1"][0])
    pvec = pvec.at[:H1, _COL_BE1].set(p["be1"][0])
    pvec = pvec.at[:H2, _COL_B2].set(p["b2"][0])
    pvec = pvec.at[:H2, _COL_G2].set(p["g2"][0])
    pvec = pvec.at[:H2, _COL_BE2].set(p["be2"][0])
    pvec = pvec.at[:H2, _COL_BA].set(p["ba"][0])
    pvec = pvec.at[:H2, _COL_W3].set(p["w3"][:, 0])
    pvec = pvec.at[0, _COL_B3].set(p["b3"][0, 0])

    return dict(
        wbd=wbd.astype(jnp.bfloat16),        # (H1+H2, sdim+adim)
        w2=p["w2"].T.astype(jnp.bfloat16),   # (H2, H1)
        pvec=pvec,                           # (Hmax, 16) f32
    )


def _layernorm_rows(x, gamma, beta):
    mean = jnp.mean(x, axis=-1, keepdims=True)
    xc = x - mean
    var = jnp.mean(xc * xc, axis=-1, keepdims=True)
    inv = jax.lax.rsqrt(var + LN_EPS)
    return xc * inv * gamma + beta


def critic_reference(state, action, p):
    """Pure-JAX f32 reference (batch-major, natural layout) for correctness."""
    sv = state @ p["w1"] + p["b1"]
    sv = _layernorm_rows(sv, p["g1"], p["be1"])
    sv = jnp.maximum(sv, 0.0)
    sv = sv @ p["w2"] + p["b2"]
    sv = _layernorm_rows(sv, p["g2"], p["be2"])
    av = jnp.maximum(action @ p["wa"] + p["ba"], 0.0)
    sav = jnp.maximum(sv + av, 0.0)
    return sav @ p["w3"] + p["b3"]


if __name__ == "__main__":
    B, SDIM, ADIM = 8, 16, 8
    HIDDEN1, HIDDEN2 = 64, 32

    key = jax.random.PRNGKey(0)
    k_params, k_s1, k_a1, k_s2, k_a2 = jax.random.split(key, 5)

    params = init_params(k_params, SDIM, ADIM, HIDDEN1, HIDDEN2)
    kparams = pack_params(params)

    # Tolerance documents the bf16-matmul-operand tradeoff (f32 accumulation,
    # f32 LayerNorm): measured error is O(1e-4) absolute on O(1e-2) outputs.
    ATOL, RTOL = 3e-3, 3e-2

    # Small batch: single full block, no grid tiling.
    state = jax.random.normal(k_s1, (B, SDIM), jnp.float32)
    action = jax.random.normal(k_a1, (B, ADIM), jnp.float32)
    q = jax.block_until_ready(critic_forward(state, action, kparams))
    q_ref = critic_reference(state, action, params)
    assert q.shape == (B, 1), q.shape
    assert jnp.allclose(q, q_ref, atol=ATOL, rtol=RTOL), (q, q_ref)

    # Larger batch: exercises the multi-tile parallel grid, the 3-deep
    # buffered streaming specs, and the masked ragged tail (1500 % 512 != 0)
    # without any wrapper-side padding or transposes.
    B2 = 1500
    state2 = jax.random.normal(k_s2, (B2, SDIM), jnp.float32)
    action2 = jax.random.normal(k_a2, (B2, ADIM), jnp.float32)
    q2 = jax.block_until_ready(
        critic_forward(state2, action2, kparams, batch_tile=512))
    q2_ref = critic_reference(state2, action2, params)
    assert q2.shape == (B2, 1), q2.shape
    assert jnp.allclose(q2, q2_ref, atol=ATOL, rtol=RTOL), (q2, q2_ref)

    print("KERNEL_OK")
</pallas_src>

<mosaic_0001>
module attributes {stable_mosaic.version = 11 : i64} {
  func.func @critic_kernel(%arg0: i32, %arg1: memref<8x16xf32, #tpu.memory_space<vmem>>, %arg2: memref<8x8xf32, #tpu.memory_space<vmem>>, %arg3: memref<96x24xbf16, #tpu.memory_space<vmem>>, %arg4: memref<32x64xbf16, #tpu.memory_space<vmem>>, %arg5: memref<64x16xf32, #tpu.memory_space<vmem>>, %arg6: memref<1x8xf32, #tpu.memory_space<vmem>>, %arg7: memref<8x24xbf16, #tpu.memory_space<vmem>>) attributes {dimension_semantics = [#tpu.dimension_semantics<parallel>], iteration_bounds = array<i64: 1>, scalar_prefetch = 0 : i64, scratch_operands = 1 : i64, tpu.core_type = #tpu.core_type<tc>, window_params = [{transform_indices = @transform_0, window_bounds = array<i64: 8, 16>}, {transform_indices = @transform_1, window_bounds = array<i64: 8, 8>}, {pipeline_mode = #tpu.pipeline_mode<synchronous>, transform_indices = @transform_2, window_bounds = array<i64: 96, 24>}, {pipeline_mode = #tpu.pipeline_mode<synchronous>, transform_indices = @transform_3, window_bounds = array<i64: 32, 64>}, {pipeline_mode = #tpu.pipeline_mode<synchronous>, transform_indices = @transform_4, window_bounds = array<i64: 64, 16>}, {transform_indices = @transform_5, window_bounds = array<i64: 1, 8>}]} {
    %c0 = arith.constant 0 : index
    %c0_0 = arith.constant 0 : index
    %0 = vector.load %arg5[%c0, %c0_0] : memref<64x16xf32, #tpu.memory_space<vmem>>, vector<64x1xf32>
    %c0_1 = arith.constant 0 : index
    %c1 = arith.constant 1 : index
    %1 = vector.load %arg5[%c0_1, %c1] : memref<64x16xf32, #tpu.memory_space<vmem>>, vector<64x1xf32>
    %c0_2 = arith.constant 0 : index
    %c2 = arith.constant 2 : index
    %2 = vector.load %arg5[%c0_2, %c2] : memref<64x16xf32, #tpu.memory_space<vmem>>, vector<64x1xf32>
    %c0_3 = arith.constant 0 : index
    %c3 = arith.constant 3 : index
    %3 = vector.load %arg5[%c0_3, %c3] : memref<64x16xf32, #tpu.memory_space<vmem>>, vector<32x1xf32>
    %c0_4 = arith.constant 0 : index
    %c4 = arith.constant 4 : index
    %4 = vector.load %arg5[%c0_4, %c4] : memref<64x16xf32, #tpu.memory_space<vmem>>, vector<32x1xf32>
    %c0_5 = arith.constant 0 : index
    %c5 = arith.constant 5 : index
    %5 = vector.load %arg5[%c0_5, %c5] : memref<64x16xf32, #tpu.memory_space<vmem>>, vector<32x1xf32>
    %c0_6 = arith.constant 0 : index
    %c6 = arith.constant 6 : index
    %6 = vector.load %arg5[%c0_6, %c6] : memref<64x16xf32, #tpu.memory_space<vmem>>, vector<32x1xf32>
    %c0_7 = arith.constant 0 : index
    %c7 = arith.constant 7 : index
    %7 = vector.load %arg5[%c0_7, %c7] : memref<64x16xf32, #tpu.memory_space<vmem>>, vector<32x1xf32>
    %c0_8 = arith.constant 0 : index
    %c8 = arith.constant 8 : index
    %8 = vector.load %arg5[%c0_8, %c8] : memref<64x16xf32, #tpu.memory_space<vmem>>, vector<1x1xf32>
    %c0_9 = arith.constant 0 : index
    %c0_10 = arith.constant 0 : index
    %9 = vector.load %arg1[%c0_9, %c0_10] : memref<8x16xf32, #tpu.memory_space<vmem>>, vector<8x16xf32>
    %10 = arith.truncf %9 : vector<8x16xf32> to vector<8x16xbf16>
    %c0_11 = arith.constant 0 : index
    %c0_12 = arith.constant 0 : index
    %11 = vector.load %arg7[%c0_11, %c0_12] : memref<8x24xbf16, #tpu.memory_space<vmem>>, vector<8x16xbf16>
    tpu.vector_store %arg7[%c0_11, %c0_12], %10 {strides = array<i32>} : memref<8x24xbf16, #tpu.memory_space<vmem>>, vector<8x16xbf16>,
    %c0_13 = arith.constant 0 : index
    %c0_14 = arith.constant 0 : index
    %12 = vector.load %arg2[%c0_13, %c0_14] : memref<8x8xf32, #tpu.memory_space<vmem>>, vector<8x8xf32>
    %13 = arith.truncf %12 : vector<8x8xf32> to vector<8x8xbf16>
    %c0_15 = arith.constant 0 : index
    %c16 = arith.constant 16 : index
    %14 = vector.load %arg7[%c0_15, %c16] : memref<8x24xbf16, #tpu.memory_space<vmem>>, vector<8x8xbf16>
    tpu.vector_store %arg7[%c0_15, %c16], %13 {strides = array<i32>} : memref<8x24xbf16, #tpu.memory_space<vmem>>, vector<8x8xbf16>,
    %c0_16 = arith.constant 0 : index
    %c0_17 = arith.constant 0 : index
    %15 = vector.load %arg3[%c0_16, %c0_17] : memref<96x24xbf16, #tpu.memory_space<vmem>>, vector<96x24xbf16>
    %c0_18 = arith.constant 0 : index
    %c0_19 = arith.constant 0 : index
    %16 = vector.load %arg7[%c0_18, %c0_19] : memref<8x24xbf16, #tpu.memory_space<vmem>>, vector<8x24xbf16>
    %cst = arith.constant dense<0.000000e+00> : vector<96x8xf32>
    %17 = tpu.matmul %15, %16, %cst {dimension_numbers = #tpu.dot_dimension_numbers<[1], [1], [0], [0], [0, 0, 1, 0], [], []>} : vector<96x24xbf16>, vector<8x24xbf16>, vector<96x8xf32> -> vector<96x8xf32>
    %18 = vector.extract_strided_slice %17 {offsets = [0, 0], sizes = [64, 8], strides = [1, 1]} : vector<96x8xf32> to vector<64x8xf32>
    %19 = vector.broadcast %0 : vector<64x1xf32> to vector<64x8xf32>
    %20 = arith.addf %18, %19 : vector<64x8xf32>
    %cst_20 = arith.constant dense<0.000000e+00> : vector<8xf32>
    %21 = vector.multi_reduction <add>, %20, %cst_20 [0] : vector<64x8xf32> to vector<8xf32>
    %22 = vector.shape_cast %21 : vector<8xf32> to vector<1x8xf32>
    %23 = arith.mulf %20, %20 : vector<64x8xf32>
    %cst_21 = arith.constant dense<0.000000e+00> : vector<8xf32>
    %24 = vector.multi_reduction <add>, %23, %cst_21 [0] : vector<64x8xf32> to vector<8xf32>
    %25 = vector.shape_cast %24 : vector<8xf32> to vector<1x8xf32>
    %cst_22 = arith.constant 1.562500e-02 : f32
    %26 = vector.broadcast %cst_22 : f32 to vector<1x8xf32>
    %27 = arith.mulf %22, %26 : vector<1x8xf32>
    %cst_23 = arith.constant 1.562500e-02 : f32
    %28 = vector.broadcast %cst_23 : f32 to vector<1x8xf32>
    %29 = arith.mulf %25, %28 : vector<1x8xf32>
    %30 = arith.mulf %27, %27 : vector<1x8xf32>
    %31 = arith.subf %29, %30 : vector<1x8xf32>
    %cst_24 = arith.constant 0.000000e+00 : f32
    %32 = vector.broadcast %cst_24 : f32 to vector<1x8xf32>
    %33 = arith.maximumf %31, %32 : vector<1x8xf32>
    %cst_25 = arith.constant 9.99999974E-6 : f32
    %34 = vector.broadcast %cst_25 : f32 to vector<1x8xf32>
    %35 = arith.addf %33, %34 : vector<1x8xf32>
    %36 = math.rsqrt %35 : vector<1x8xf32>
    %37 = vector.broadcast %27 : vector<1x8xf32> to vector<64x8xf32>
    %38 = arith.subf %20, %37 : vector<64x8xf32>
    %39 = vector.broadcast %36 : vector<1x8xf32> to vector<64x8xf32>
    %40 = arith.mulf %38, %39 : vector<64x8xf32>
    %41 = vector.broadcast %1 : vector<64x1xf32> to vector<64x8xf32>
    %42 = arith.mulf %40, %41 : vector<64x8xf32>
    %43 = vector.broadcast %2 : vector<64x1xf32> to vector<64x8xf32>
    %44 = arith.addf %42, %43 : vector<64x8xf32>
    %cst_26 = arith.constant 0.000000e+00 : f32
    %45 = vector.broadcast %cst_26 : f32 to vector<64x8xf32>
    %46 = arith.maximumf %44, %45 : vector<64x8xf32>
    %47 = vector.extract_strided_slice %17 {offsets = [64, 0], sizes = [32, 8], strides = [1, 1]} : vector<96x8xf32> to vector<32x8xf32>
    %48 = vector.broadcast %6 : vector<32x1xf32> to vector<32x8xf32>
    %49 = arith.addf %47, %48 : vector<32x8xf32>
    %cst_27 = arith.constant 0.000000e+00 : f32
    %50 = vector.broadcast %cst_27 : f32 to vector<32x8xf32>
    %51 = arith.maximumf %49, %50 : vector<32x8xf32>
    %c0_28 = arith.constant 0 : index
    %c0_29 = arith.constant 0 : index
    %52 = vector.load %arg4[%c0_28, %c0_29] : memref<32x64xbf16, #tpu.memory_space<vmem>>, vector<32x64xbf16>
    %53 = arith.truncf %46 : vector<64x8xf32> to vector<64x8xbf16>
    %cst_30 = arith.constant dense<0.000000e+00> : vector<32x8xf32>
    %54 = tpu.matmul %52, %53, %cst_30 {dimension_numbers = #tpu.dot_dimension_numbers<[1], [0], [0], [1], [0, 0, 1, 1], [], []>} : vector<32x64xbf16>, vector<64x8xbf16>, vector<32x8xf32> -> vector<32x8xf32>
    %55 = vector.broadcast %3 : vector<32x1xf32> to vector<32x8xf32>
    %56 = arith.addf %54, %55 : vector<32x8xf32>
    %cst_31 = arith.constant dense<0.000000e+00> : vector<8xf32>
    %57 = vector.multi_reduction <add>, %56, %cst_31 [0] : vector<32x8xf32> to vector<8xf32>
    %58 = vector.shape_cast %57 : vector<8xf32> to vector<1x8xf32>
    %59 = arith.mulf %56, %56 : vector<32x8xf32>
    %cst_32 = arith.constant dense<0.000000e+00> : vector<8xf32>
    %60 = vector.multi_reduction <add>, %59, %cst_32 [0] : vector<32x8xf32> to vector<8xf32>
    %61 = vector.shape_cast %60 : vector<8xf32> to vector<1x8xf32>
    %cst_33 = arith.constant 3.125000e-02 : f32
    %62 = vector.broadcast %cst_33 : f32 to vector<1x8xf32>
    %63 = arith.mulf %58, %62 : vector<1x8xf32>
    %cst_34 = arith.constant 3.125000e-02 : f32
    %64 = vector.broadcast %cst_34 : f32 to vector<1x8xf32>
    %65 = arith.mulf %61, %64 : vector<1x8xf32>
    %66 = arith.mulf %63, %63 : vector<1x8xf32>
    %67 = arith.subf %65, %66 : vector<1x8xf32>
    %cst_35 = arith.constant 0.000000e+00 : f32
    %68 = vector.broadcast %cst_35 : f32 to vector<1x8xf32>
    %69 = arith.maximumf %67, %68 : vector<1x8xf32>
    %cst_36 = arith.constant 9.99999974E-6 : f32
    %70 = vector.broadcast %cst_36 : f32 to vector<1x8xf32>
    %71 = arith.addf %69, %70 : vector<1x8xf32>
    %72 = math.rsqrt %71 : vector<1x8xf32>
    %73 = vector.broadcast %63 : vector<1x8xf32> to vector<32x8xf32>
    %74 = arith.subf %56, %73 : vector<32x8xf32>
    %75 = vector.broadcast %72 : vector<1x8xf32> to vector<32x8xf32>
    %76 = arith.mulf %74, %75 : vector<32x8xf32>
    %77 = vector.broadcast %4 : vector<32x1xf32> to vector<32x8xf32>
    %78 = arith.mulf %76, %77 : vector<32x8xf32>
    %79 = vector.broadcast %5 : vector<32x1xf32> to vector<32x8xf32>
    %80 = arith.addf %78, %79 : vector<32x8xf32>
    %81 = arith.addf %80, %51 : vector<32x8xf32>
    %cst_37 = arith.constant 0.000000e+00 : f32
    %82 = vector.broadcast %cst_37 : f32 to vector<32x8xf32>
    %83 = arith.maximumf %81, %82 : vector<32x8xf32>
    %84 = vector.broadcast %7 : vector<32x1xf32> to vector<32x8xf32>
    %85 = arith.mulf %83, %84 : vector<32x8xf32>
    %cst_38 = arith.constant dense<0.000000e+00> : vector<8xf32>
    %86 = vector.multi_reduction <add>, %85, %cst_38 [0] : vector<32x8xf32> to vector<8xf32>
    %87 = vector.shape_cast %86 : vector<8xf32> to vector<1x8xf32>
    %88 = vector.broadcast %8 : vector<1x1xf32> to vector<1x8xf32>
    %89 = arith.addf %87, %88 : vector<1x8xf32>
    %c0_39 = arith.constant 0 : index
    %c0_40 = arith.constant 0 : index
    %90 = vector.load %arg6[%c0_39, %c0_40] : memref<1x8xf32, #tpu.memory_space<vmem>>, vector<1x8xf32>
    tpu.vector_store %arg6[%c0_39, %c0_40], %89 {strides = array<i32>} : memref<1x8xf32, #tpu.memory_space<vmem>>, vector<1x8xf32>,
    return
  }
  func.func @transform_0(%arg0: i32) -> (i32, i32) {
    %c0_i32 = arith.constant 0 : i32
    %c0_i32_0 = arith.constant 0 : i32
    return %arg0, %c0_i32 : i32, i32
  }
  func.func @transform_1(%arg0: i32) -> (i32, i32) {
    %c0_i32 = arith.constant 0 : i32
    %c0_i32_0 = arith.constant 0 : i32
    return %arg0, %c0_i32 : i32, i32
  }
  func.func @transform_2(%arg0: i32) -> (i32, i32) {
    %c0_i32 = arith.constant 0 : i32
    %c0_i32_0 = arith.constant 0 : i32
    %c0_i32_1 = arith.constant 0 : i32
    return %c0_i32, %c0_i32_0 : i32, i32
  }
  func.func @transform_3(%arg0: i32) -> (i32, i32) {
    %c0_i32 = arith.constant 0 : i32
    %c0_i32_0 = arith.constant 0 : i32
    %c0_i32_1 = arith.constant 0 : i32
    return %c0_i32, %c0_i32_0 : i32, i32
  }
  func.func @transform_4(%arg0: i32) -> (i32, i32) {
    %c0_i32 = arith.constant 0 : i32
    %c0_i32_0 = arith.constant 0 : i32
    %c0_i32_1 = arith.constant 0 : i32
    return %c0_i32, %c0_i32_0 : i32, i32
  }
  func.func @transform_5(%arg0: i32) -> (i32, i32) {
    %c0_i32 = arith.constant 0 : i32
    %c0_i32_0 = arith.constant 0 : i32
    return %c0_i32, %arg0 : i32, i32
  }
}

</mosaic_0001>

<bundles_post_ra>
// kernel: tpu_custom_call.1
= control target key start
LH: loop header
LB: loop body
LE: loop exit
PB: predicated region body
PF: predicated region fallthrough
CT: control target
= control target key end

     0   :  { %vm33_vm0 = vcmask 125952   ;;  %vm88_vm1 = vcmask 195584   ;;  %s794_s24 = smov 16   ;;  %s1060_s0 = inlined_call_operand.vmem [shape: f32[8,16], index: 0, kind: input, shape index: {}]   ;;  %s1061_s1 = inlined_call_operand.vmem [shape: f32[8,8], index: 1, kind: input, shape index: {}]   ;;  %s1062_s2 = inlined_call_operand.vmem [shape: bf16[96,24], index: 2, kind: input, shape index: {}]   ;;  %s1063_s3 = inlined_call_operand.vmem [shape: bf16[32,64], index: 3, kind: input, shape index: {}]   ;;  %s1064_s4 = inlined_call_operand.vmem [shape: f32[64,16], index: 4, kind: input, shape index: {}]   ;;  %s1065_s5 = inlined_call_operand.hbm [shape: f32[1,8], index: 5, kind: output, shape index: {}]  }
   0x1   :  { %v35_v0 = vld [vmem:[%s1061_s1] sm:$0xff] }
   0x2   :  { %v31_v1 = vld [vmem:[%s1060_s0] sm:$0xff]  ;;  %v680_v2 = vpack.c.bf16 %v35_v0, %v35_v0 }
   0x3   :  { %v32_v3 = vpack.c.bf16 %v31_v1, %v31_v1  ;;  %v758_v4 = vld [vmem:[%s1062_s2] sm:$0xff]  }
   0x4   :  { %40 = vrot.lane.b32.xlu0 %v680_v2, %s794_s24  ;;  %696 = vmatprep.mubr.msk.bf16.mxu0 %vm88_vm1, %v758_v4 }
   0x5   :  { %34 = vst.msk [vmem:[#allocation2] sm:$0xf] %vm33_vm0, %v32_v3 }
   0x6   :  { %10 = vsyncpa [#allocation4], 0  ;;  %v848_v5 = vld [vmem:[%s1064_s4 + $0x8] sm:$0xff]  ;;  %v795_v6 = vmov 0   ;;  %v853_v7 = vld [vmem:[%s1064_s4] sm:$0xff]  ;;  %v796_v13 = vmov 1  }
   0x7   :  { %733 = vset.pattern.permute.xlu1 %v795_v6  ;;  %732 = vset.pattern.permute.xlu0 %v795_v6  ;;  %v860_v8 = vld [vmem:[%s1064_s4 + $0x10] sm:$0xff]  ;;  %v26_v9 = vld [vmem:[%s1064_s4 + $0x20] sm:$0xff]  ;;  %v869_v10 = vld [vmem:[%s1064_s4 + $0x18] sm:$0xff]  ;;  %v797_v15 = vmov 2   ;;  %vm43_vm2 = vcmask 191616   ;;  %vm459_vm3 = vcmask 523264  }
   0x8   :  { %198 = vperm.xlu1 %733, %v848_v5   ;;  %193 = vperm.xlu0 %732, %v853_v7   ;;  %v28_v11 = vld [vmem:[%s1064_s4 + $0x30] sm:$0xff]  ;;  %v27_v12 = vld [vmem:[%s1064_s4 + $0x28] sm:$0xff]  ;;  %v29_v14 = vld [vmem:[%s1064_s4 + $0x38] sm:$0xff]  ;;  %v798_v25 = vmov 3   ;;  %v799_v26 = vmov 6   ;;  %v800_v27 = vmov 4  }
   0x9   :  { %v759_v19 = vld [vmem:[%s1062_s2 + $0x8] sm:$0xff]   ;;  %v760_v20 = vld [vmem:[%s1062_s2 + $0x10] sm:$0xff]   ;;  %v761_v21 = vld [vmem:[%s1062_s2 + $0x18] sm:$0xff]   ;;  %v801_v28 = vmov 5   ;;  %v802_v31 = vmov 7   ;;  %v803_v33 = vmov 8  }
   0xa   :  { %v762_v22 = vld [vmem:[%s1063_s3] sm:$0xff]   ;;  %v765_v24 = vld [vmem:[%s1062_s2 + $0x28] sm:$0xff]   ;;  %vm239_vm4 = vcmask 64512   ;;  %vm647_vm5 = vcmask 57344  }
   0xb   :  { %716 = vmatprep.mubr.msk.bf16.mxu1 %vm459_vm3, %v762_v22  ;;  %v764_v23 = vld [vmem:[%s1062_s2 + $0x20] sm:$0xff]  }
   0xc   :  { %203 = vperm.xlu1 %733, %v860_v8   ;;  %213 = vperm.xlu0 %732, %v26_v9   ;;  %v30_v53 = vld [vmem:[%s1064_s4] sm:$0x1] }
  0x10   :  { %208 = vperm.xlu1 %733, %v869_v10   ;;  %223 = vperm.xlu0 %732, %v28_v11  }
  0x14   :  { %218 = vperm.xlu1 %733, %v27_v12   ;;  %734 = vset.pattern.permute.xlu0 %v796_v13 }
  0x15   :  { %314 = vperm.xlu0 %734, %v853_v7  }
  0x18   :  { %228 = vperm.xlu1 %733, %v29_v14  }
  0x19   :  { %330 = vperm.xlu0 %734, %v26_v9  }
  0x1c   :  { %735 = vset.pattern.permute.xlu1 %v796_v13 }
  0x1d   :  { %318 = vperm.xlu1 %735, %v848_v5   ;;  %739 = vset.pattern.permute.xlu0 %v797_v15 }
  0x1e   :  { %358 = vperm.xlu0 %739, %v848_v5  }
  0x21   :  { %736 = vset.pattern.permute.xlu1 %v797_v15 }
  0x22   :  { %354 = vperm.xlu1 %736, %v853_v7   ;;  %362 = vperm.xlu0 %739, %v860_v8  }
  0x26   :  { %737 = vset.pattern.permute.xlu1 %v796_v13  ;;  %374 = vperm.xlu0 %739, %v27_v12  }
  0x27   :  { %322 = vperm.xlu1 %737, %v860_v8  }
  0x2a   :  { %378 = vperm.xlu0 %739, %v28_v11  }
  0x2b   :  { %326 = vperm.xlu1 %737, %v869_v10  }
  0x2e   :  { %744 = vset.pattern.permute.xlu0 %v798_v25 }
  0x2f   :  { %738 = vset.pattern.permute.xlu1 %v797_v15  ;;  %434 = vperm.xlu0 %744, %v853_v7  }
  0x30   :  { %366 = vperm.xlu1 %738, %v869_v10  }
  0x33   :  { %446 = vperm.xlu0 %744, %v869_v10  }
  0x34   :  { %740 = vset.pattern.permute.xlu1 %v796_v13 }
  0x35   :  { %334 = vperm.xlu1 %740, %v27_v12  }
  0x37   :  { %747 = vset.pattern.permute.xlu0 %v799_v26 }
  0x38   :  { %406 = vperm.xlu0 %747, %v848_v5  }
  0x39   :  { %741 = vset.pattern.permute.xlu1 %v797_v15 }
  0x3a   :  { %370 = vperm.xlu1 %741, %v26_v9  }
  0x3c   :  { %410 = vperm.xlu0 %747, %v860_v8  }
  0x3e   :  { %742 = vset.pattern.permute.xlu1 %v796_v13 }
  0x3f   :  { %338 = vperm.xlu1 %742, %v28_v11  }
  0x40   :  { %749 = vset.pattern.permute.xlu0 %v801_v28 }
  0x41   :  { %581 = vperm.xlu0 %749, %v853_v7  }
  0x43   :  { %342 = vperm.xlu1 %742, %v29_v14  }
  0x45   :  { %752 = vset.pattern.permute.xlu0 %v800_v27 }
  0x46   :  { %573 = vperm.xlu0 %752, %v869_v10  }
  0x47   :  { %743 = vset.pattern.permute.xlu1 %v797_v15 }
  0x48   :  { %382 = vperm.xlu1 %743, %v29_v14  }
  0x4a   :  { %754 = vset.pattern.permute.xlu0 %v802_v31 }
  0x4b   :  { %609 = vperm.xlu0 %754, %v853_v7  }
  0x4c   :  { %745 = vset.pattern.permute.xlu1 %v798_v25 }
  0x4d   :  { %438 = vperm.xlu1 %745, %v848_v5  }
  0x4f   :  { %621 = vperm.xlu0 %754, %v869_v10  }
  0x51   :  { %442 = vperm.xlu1 %745, %v860_v8  }
  0x53   :  { %757 = vset.pattern.permute.xlu0 %v803_v33 }
  0x55   :  { %746 = vset.pattern.permute.xlu1 %v799_v26 }
  0x56   :  { %402 = vperm.xlu1 %746, %v853_v7  }
  0x5a   :  { %748 = vset.pattern.permute.xlu1 %v800_v27 }
  0x5b   :  { %561 = vperm.xlu1 %748, %v853_v7  }
  0x5f   :  { %565 = vperm.xlu1 %748, %v848_v5  }
  0x63   :  { %569 = vperm.xlu1 %748, %v860_v8  }
  0x67   :  { %750 = vset.pattern.permute.xlu1 %v801_v28 }
  0x68   :  { %585 = vperm.xlu1 %750, %v848_v5  }
  0x6c   :  { %751 = vset.pattern.permute.xlu1 %v799_v26 }
  0x6d   :  { %414 = vperm.xlu1 %751, %v869_v10  }
  0x71   :  { %753 = vset.pattern.permute.xlu1 %v801_v28 }
  0x72   :  { %589 = vperm.xlu1 %753, %v860_v8  }
  0x76   :  { %v41_v16 = vpop.permute.xlu0 %40  ;;  %593 = vperm.xlu1 %753, %v869_v10  }
  0x77   :  { %44 = vst.msk [vmem:[#allocation2] sm:$0xf] %vm43_vm2, %v41_v16 }
  0x7a   :  { %755 = vset.pattern.permute.xlu1 %v802_v31 }
  0x7b   :  { %613 = vperm.xlu1 %755, %v848_v5  }
  0x7e   :  { %v57_v17 = vld [vmem:[#allocation2] sm:$0xf] }
  0x7f   :  { %720 = vmatprep.subr.msk.bf16.mxu0 %vm88_vm1, %v57_v17  ;;  %v108_v18 = vsel %vm88_vm1, %v57_v17, 0  ;;  %617 = vperm.xlu1 %755, %v860_v8  }
  0x80   :  { %695 = vmatpush3.bf16.xpose.msra.mxu0 %v108_v18 }
  0x83   :  { %756 = vset.pattern.permute.xlu1 %v803_v33 }
  0x84   :  { %643 = vperm.xlu1 %756, %v30_v53  }
  0x87   :  { %697 = vmatmul.mubr.msk.bf16.vlgmr.msra.gmra.mrb[0].mxu0 %vm88_vm1, %v759_v19  ;;  %v199_v29 = vpop.permute.xlu1 %198  ;;  %v194_v35 = vpop.permute.xlu0 %193 }
  0x88   :  { %700 = vmatprep.mubr.msk.bf16.mxu0 %vm88_vm1, %v760_v20 }
  0x8b   :  { %v204_v30 = vpop.permute.xlu1 %203  ;;  %v214_v44 = vpop.permute.xlu0 %213 }
  0x8f   :  { %701 = vmatmul.mubr.msk.bf16.gmra.mrb[4].mxu0 %vm88_vm1, %v761_v21  ;;  %v209_v32 = vpop.permute.xlu1 %208  ;;  %v224_v1 = vpop.permute.xlu0 %223 }
  0x90   :  { %704 = vmatprep.mubr.msk.bf16.mxu0 %vm88_vm1, %v764_v23 }
  0x93   :  { %v219_v34 = vpop.permute.xlu1 %218 }
  0x97   :  { %705 = vmatmul.mubr.msk.bf16.gmra.mrb[8].mxu0 %vm88_vm1, %v765_v24  ;;  %v229_v36 = vpop.permute.xlu1 %228 }
  0x9c   :  { %v938_v43 = vpop.permute.xlu1 %318 }
  0xa1   :  { %v964_v62 = vpop.permute.xlu1 %354 }
  0xa6   :  { %v323_v21 = vpop.permute.xlu1 %322 }
  0xaa   :  { %v327_v33 = vpop.permute.xlu1 %326 }
 0x15a   :  { %v698_v37 = vpop.f32.mrb[0].mxu0 }
 0x15b   :  { %v144_v38 = vpop.f32.mrb[1].mxu0  ;;  %v934_v39 = vadd.f32 %v698_v37, %v204_v30 }
 0x15c   :  { %v936_v40 = vadd.f32 %v194_v35, %v144_v38  ;;  %v699_v41 = vpop.f32.mrb[2].mxu0 }
 0x15d   :  { %v147_v42 = vpop.f32.mrb[3].mxu0  ;;  %v942_v46 = vadd.f32 %v699_v41, %v209_v32  ;;  %v263_v48 = vmul.f32 %v934_v39, %v934_v39  ;;  %v243_v54 = vsel %vm239_vm4, %v934_v39, 0.0 }
 0x15e   :  { %v261_v45 = vmul.f32 %v936_v40, %v936_v40  ;;  %v944_v47 = vadd.f32 %v199_v29, %v147_v42  ;;  %v240_v49 = vsel %vm239_vm4, %v936_v40, 0.0  ;;  %v367_v42 = vpop.permute.xlu1 %366 }
 0x15f   :  { %v264_v56 = vmul.f32 %v942_v46, %v942_v46  ;;  %v272_v63 = vsel %vm239_vm4, %v263_v48, 0.0  ;;  %v245_v0 = vsel %vm239_vm4, %v942_v46, 0.0 }
 0x160   :  { %v241_v50 = vsel %vm239_vm4, %v944_v47, 0.0  ;;  %v262_v51 = vmul.f32 %v944_v47, %v944_v47  ;;  %v269_v55 = vsel %vm239_vm4, %v261_v45, 0.0 }
 0x161   :  { %v242_v52 = vadd.f32 %v241_v50, %v240_v49  ;;  %v274_v8 = vsel %vm239_vm4, %v264_v56, 0.0 }
 0x162   :  { %v270_v57 = vsel %vm239_vm4, %v262_v51, 0.0  ;;  %v702_v58 = vpop.f32.mrb[4].mxu0  ;;  %v335_v53 = vpop.permute.xlu1 %334 }
 0x163   :  { %v244_v59 = vadd.f32 %v243_v54, %v242_v52  ;;  %v271_v60 = vadd.f32 %v270_v57, %v269_v55  ;;  %v160_v61 = vpop.f32.mrb[5].mxu0  ;;  %v971_v5 = vadd.f32 %v702_v58, %v224_v1 }
 0x164   :  { %v969_v2 = vadd.f32 %v214_v44, %v160_v61  ;;  %v703_v3 = vpop.f32.mrb[6].mxu0  ;;  %v315_v44 = vpop.permute.xlu0 %314 }
 0x165   :  { %v273_v4 = vadd.f32 %v272_v63, %v271_v60  ;;  %v246_v6 = vadd.f32 %v245_v0, %v244_v59  ;;  %v163_v7 = vpop.f32.mrb[7].mxu0  ;;  %v980_v14 = vadd.f32 %v703_v3, %v229_v36  ;;  %v267_v17 = vmul.f32 %v971_v5, %v971_v5 }
 0x166   :  { %v247_v9 = vsel %vm239_vm4, %v969_v2, 0.0  ;;  %v265_v10 = vmul.f32 %v969_v2, %v969_v2  ;;  %v978_v11 = vadd.f32 %v219_v34, %v163_v7  ;;  %v251_v22 = vsel %vm239_vm4, %v971_v5, 0.0 }
 0x167   :  { %v248_v12 = vadd.f32 %v247_v9, %v246_v6  ;;  %v275_v13 = vadd.f32 %v274_v8, %v273_v4  ;;  %v268_v23 = vmul.f32 %v980_v14, %v980_v14  ;;  %v253_v26 = vsel %vm239_vm4, %v980_v14, 0.0  ;;  %v371_v6 = vpop.permute.xlu1 %370 }
 0x168   :  { %v276_v15 = vsel %vm239_vm4, %v265_v10, 0.0  ;;  %v249_v16 = vsel %vm239_vm4, %v978_v11, 0.0  ;;  %v266_v20 = vmul.f32 %v978_v11, %v978_v11  ;;  %v280_v28 = vsel %vm239_vm4, %v267_v17, 0.0  ;;  %v331_v54 = vpop.permute.xlu0 %330 }
 0x169   :  { %v277_v18 = vadd.f32 %v276_v15, %v275_v13  ;;  %v250_v19 = vadd.f32 %v249_v16, %v248_v12  ;;  %v282_v31 = vsel %vm239_vm4, %v268_v23, 0.0 }
 0x16a   :  { %v278_v25 = vsel %vm239_vm4, %v266_v20, 0.0 }
 0x16b   :  { %v252_v24 = vadd.f32 %v251_v22, %v250_v19  ;;  %v279_v27 = vadd.f32 %v278_v25, %v277_v18 }
 0x16c   :  { %v359_v7 = vpop.permute.xlu0 %358 }
 0x16d   :  { %v254_v29 = vadd.f32 %v253_v26, %v252_v24  ;;  %v281_v30 = vadd.f32 %v280_v28, %v279_v27 }
 0x16f   :  { %v255_v32 = vrot.slane %v254_v29, 4  ;;  %v283_v34 = vadd.f32 %v282_v31, %v281_v30 }
 0x170   :  { %v363_v9 = vpop.permute.xlu0 %362 }
 0x171   :  { %v256_v35 = vadd.f32 %v255_v32, %v254_v29  ;;  %v284_v36 = vrot.slane %v283_v34, 4 }
 0x173   :  { %v257_v37 = vrot.slane %v256_v35, 2  ;;  %v285_v38 = vadd.f32 %v284_v36, %v283_v34 }
 0x174   :  { %v375_v10 = vpop.permute.xlu0 %374 }
 0x175   :  { %v258_v41 = vadd.f32 %v257_v37, %v256_v35  ;;  %v286_v45 = vrot.slane %v285_v38, 2 }
 0x177   :  { %v259_v48 = vrot.slane %v258_v41, 1  ;;  %v287_v49 = vadd.f32 %v286_v45, %v285_v38 }
 0x178   :  { %v379_v23 = vpop.permute.xlu0 %378 }
 0x179   :  { %v260_v50 = vadd.f32 %v259_v48, %v258_v41  ;;  %v288_v51 = vrot.slane %v287_v49, 1 }
 0x17b   :  { %v290_v52 = vmul.f32 0.015625, %v260_v50  ;;  %v289_v55 = vadd.f32 %v288_v51, %v287_v49  ;;  %v1012_v51 = vpop.f32.mrb[8].mxu0 }
 0x17d   :  { %v292_v56 = vmul.f32 %v290_v52, %v290_v52  ;;  %v298_v57 = vsub.f32 %v944_v47, %v290_v52  ;;  %v299_v58 = vsub.f32 %v934_v39, %v290_v52  ;;  %v300_v59 = vsub.f32 %v942_v46, %v290_v52  ;;  %v339_v39 = vpop.permute.xlu1 %338 }
 0x17e   :  { %v291_v60 = vmul.f32 0.015625, %v289_v55  ;;  %v297_v61 = vsub.f32 %v936_v40, %v290_v52  ;;  %v302_v63 = vsub.f32 %v978_v11, %v290_v52  ;;  %v301_v0 = vsub.f32 %v969_v2, %v290_v52 }
 0x17f   :  { %v303_v1 = vsub.f32 %v971_v5, %v290_v52  ;;  %v304_v3 = vsub.f32 %v980_v14, %v290_v52  ;;  %v1014_v52 = vpop.f32.mrb[9].mxu0 }
 0x180   :  { %v293_v4 = vsub.f32 %v291_v60, %v292_v56  ;;  %v435_v56 = vpop.permute.xlu0 %434 }
 0x181   :  { %v343_v46 = vpop.permute.xlu1 %342 }
 0x182   :  { %v294_v8 = vmax.f32 %v293_v4, 0.0 }
 0x184   :  { %v295_v47 = vadd.f32 1e-05, %v294_v8  ;;  %v447_v60 = vpop.permute.xlu0 %446 }
 0x185   :  { %v383_v22 = vpop.permute.xlu1 %382 }
 0x186   :  { %766 = vrsqrt.f32 %v295_v47 }
 0x189   :  { %v439_v55 = vpop.permute.xlu1 %438 }
 0x190   :  { %v767_v12 = vpop.eup %766 }
 0x191   :  { %v306_v40 = vmul.f32 %v767_v12, %v298_v57  ;;  %v307_v13 = vmul.f32 %v767_v12, %v299_v58  ;;  %v308_v11 = vmul.f32 %v767_v12, %v300_v59  ;;  %v305_v15 = vmul.f32 %v767_v12, %v297_v61  ;;  %v443_v57 = vpop.permute.xlu1 %442 }
 0x192   :  { %v310_v2 = vmul.f32 %v767_v12, %v302_v63  ;;  %v309_v16 = vmul.f32 %v767_v12, %v301_v0  ;;  %v311_v5 = vmul.f32 %v767_v12, %v303_v1  ;;  %v312_v17 = vmul.f32 %v767_v12, %v304_v3 }
 0x193   :  { %v346_v14 = vmul.f32 %v938_v43, %v306_v40  ;;  %v347_v18 = vmul.f32 %v323_v21, %v307_v13  ;;  %v348_v19 = vmul.f32 %v327_v33, %v308_v11  ;;  %v345_v20 = vmul.f32 %v315_v44, %v305_v15 }
 0x194   :  { %v350_v24 = vmul.f32 %v335_v53, %v310_v2  ;;  %v349_v25 = vmul.f32 %v331_v54, %v309_v16  ;;  %v351_v26 = vmul.f32 %v339_v39, %v311_v5  ;;  %v352_v27 = vmul.f32 %v343_v46, %v312_v17  ;;  %v1016_v53 = vpop.f32.mrb[10].mxu0 }
 0x195   :  { %v388_v28 = vadd.f32 %v367_v42, %v348_v19  ;;  %v385_v29 = vadd.f32 %v964_v62, %v345_v20  ;;  %v386_v30 = vadd.f32 %v359_v7, %v346_v14  ;;  %v387_v31 = vadd.f32 %v363_v9, %v347_v18  ;;  %v763_v62 = vld [vmem:[%s1063_s3 + $0x8] sm:$0xff]   ;;  %v1018_v54 = vpop.f32.mrb[11].mxu0  ;;  %v403_v3 = vpop.permute.xlu1 %402  ;;  %s804_s3 = smov [#allocation3]  }
 0x196   :  { %v389_v32 = vadd.f32 %v371_v6, %v349_v25  ;;  %v390_v34 = vadd.f32 %v375_v10, %v350_v24  ;;  %v392_v35 = vadd.f32 %v383_v22, %v352_v27  ;;  %v391_v36 = vadd.f32 %v379_v23, %v351_v26  ;;  %s655_s26 = sshll.u32 %s804_s3, 4  ;;  %s656_s26 = int_to_ptr.vmem [resolvable:$true] %s655_s26 }
 0x197   :  { %v396_v37 = vmax.f32 %v388_v28, 0.0  ;;  %v393_v43 = vmax.f32 %v385_v29, 0.0  ;;  %v394_v21 = vmax.f32 %v386_v30, 0.0  ;;  %v395_v33 = vmax.f32 %v387_v31, 0.0  ;;  %s770_s27 = scalar_lea.vmem %s656_s26, 16  ;;  %s774_s28 = scalar_lea.vmem %s656_s26, 32 }
 0x198   :  { %v397_v38 = vmax.f32 %v389_v32, 0.0  ;;  %v398_v41 = vmax.f32 %v390_v34, 0.0  ;;  %v400_v44 = vmax.f32 %v392_v35, 0.0  ;;  %v399_v45 = vmax.f32 %v391_v36, 0.0  ;;  %p771_p0 = scmp.ne.s32.totalorder %s656_s26, %s770_s27  ;;  %p775_p1 = scmp.lt.s32.totalorder %s656_s26, %s656_s26 }
 0x199   :  { %v430_v48 = vpack.c.bf16 %v396_v37, %v395_v33  ;;  %v429_v49 = vpack.c.bf16 %v394_v21, %v393_v43  ;;  %v562_v2 = vpop.permute.xlu1 %561  ;;  %p776_p2 = scmp.lt.s32.totalorder %s774_s28, %s770_s27 }
 0x19a   :  { %v431_v50 = vpack.c.bf16 %v398_v41, %v397_v38  ;;  %v432_v42 = vpack.c.bf16 %v400_v44, %v399_v45  ;;  %v407_v41 = vpop.permute.xlu0 %406 }
 0x19b   :  { %708 = vmatprep.subr.bf16.mxu1 %v429_v49  ;;  %p777_p3 = por %p776_p2, %p775_p1 }
 0x19c   :  { %709 = vmatpush3.bf16.msra.mxu1 %v429_v49 }
 0x19d   :  { %710 = vmatprep.subr.bf16.mxu1 %v430_v48  ;;  %v566_v24 = vpop.permute.xlu1 %565  ;;  %p778_p4 = pnand %p777_p3, %p771_p0 }
 0x1a0   :  { %711 = vmatpush3.bf16.msra.mxu1 %v430_v48 }
 0x1a1   :  { %712 = vmatprep.subr.bf16.mxu1 %v431_v50  ;;  %v570_v31 = vpop.permute.xlu1 %569 }
 0x1a4   :  { %713 = vmatpush3.bf16.msra.mxu1 %v431_v50 }
 0x1a5   :  { %714 = vmatprep.subr.bf16.mxu1 %v432_v42  ;;  %v586_v37 = vpop.permute.xlu1 %585 }
 0x1a8   :  { %715 = vmatpush3.bf16.msra.mxu1 %v432_v42 }
 0x1a9   :  { %v415_v50 = vpop.permute.xlu1 %414 }
 0x1ab   :  { %717 = vmatmul.mubr.msk.bf16.vlgmr.msra.gmra.mrb[0].mxu1 %vm459_vm3, %v763_v62  ;;  %v411_v62 = vpop.permute.xlu0 %410 }
 0x27e   :  { %v718_v58 = vpop.f32.mrb[0].mxu1 }
 0x27f   :  { %v500_v59 = vpop.f32.mrb[1].mxu1  ;;  %v1020_v61 = vadd.f32 %v718_v58, %v443_v57 }
 0x280   :  { %v1022_v63 = vadd.f32 %v500_v59, %v435_v56  ;;  %v719_v0 = vpop.f32.mrb[2].mxu1  ;;  %v582_v56 = vpop.permute.xlu0 %581 }
 0x281   :  { %v503_v1 = vpop.f32.mrb[3].mxu1  ;;  %v512_v6 = vadd.f32 %v719_v0, %v447_v60  ;;  %v530_v8 = vmul.f32 %v1020_v61, %v1020_v61  ;;  %v518_v10 = vsel %vm239_vm4, %v1020_v61, 0.0  ;;  %v417_v60 = vadd.f32 %v403_v3, %v1014_v52 }
 0x282   :  { %v528_v4 = vmul.f32 %v1022_v63, %v1022_v63  ;;  %v504_v7 = vadd.f32 %v503_v1, %v439_v55  ;;  %v515_v47 = vsel %vm239_vm4, %v1022_v63, 0.0  ;;  %v590_v55 = vpop.permute.xlu1 %589  ;;  %v420_v0 = vadd.f32 %v1016_v53, %v415_v50 }
 0x283   :  { %v531_v40 = vmul.f32 %v512_v6, %v512_v6  ;;  %v535_v16 = vsel %vm239_vm4, %v530_v8, 0.0  ;;  %v520_v5 = vsel %vm239_vm4, %v512_v6, 0.0 }
 0x284   :  { %v516_v39 = vsel %vm239_vm4, %v504_v7, 0.0  ;;  %v529_v9 = vmul.f32 %v504_v7, %v504_v7  ;;  %v532_v12 = vsel %vm239_vm4, %v528_v4, 0.0  ;;  %v574_v58 = vpop.permute.xlu0 %573 }
 0x285   :  { %v517_v46 = vadd.f32 %v516_v39, %v515_v47  ;;  %v537_v18 = vsel %vm239_vm4, %v531_v40, 0.0 }
 0x286   :  { %v533_v13 = vsel %vm239_vm4, %v529_v9, 0.0  ;;  %v594_v57 = vpop.permute.xlu1 %593 }
 0x287   :  { %v519_v11 = vadd.f32 %v518_v10, %v517_v46  ;;  %v534_v15 = vadd.f32 %v533_v13, %v532_v12  ;;  %v421_v46 = vmax.f32 %v417_v60, 0.0  ;;  %v424_v12 = vmax.f32 %v420_v0, 0.0 }
 0x288   :  { %v610_v52 = vpop.permute.xlu0 %609 }
 0x289   :  { %v521_v17 = vadd.f32 %v520_v5, %v519_v11  ;;  %v536_v14 = vadd.f32 %v535_v16, %v534_v15 }
 0x28a   :  { %v614_v13 = vpop.permute.xlu1 %613 }
 0x28b   :  { %v522_v19 = vrot.slane %v521_v17, 4  ;;  %v538_v20 = vadd.f32 %v537_v18, %v536_v14 }
 0x28d   :  { %v523_v22 = vadd.f32 %v522_v19, %v521_v17  ;;  %v539_v23 = vrot.slane %v538_v20, 4 }
 0x28e   :  { %v618_v19 = vpop.permute.xlu1 %617 }
 0x28f   :  { %v524_v25 = vrot.slane %v523_v22, 2  ;;  %v540_v26 = vadd.f32 %v539_v23, %v538_v20  ;;  %v622_v20 = vpop.permute.xlu0 %621 }
 0x291   :  { %v525_v27 = vadd.f32 %v524_v25, %v523_v22  ;;  %v541_v28 = vrot.slane %v540_v26, 2 }
 0x293   :  { %v526_v29 = vrot.slane %v525_v27, 1  ;;  %v542_v30 = vadd.f32 %v541_v28, %v540_v26 }
 0x295   :  { %v527_v32 = vadd.f32 %v526_v29, %v525_v27  ;;  %v543_v34 = vrot.slane %v542_v30, 1 }
 0x297   :  { %v544_v35 = vadd.f32 %v543_v34, %v542_v30  ;;  %v545_v36 = vmul.f32 0.03125, %v527_v32 }
 0x299   :  { %v546_v43 = vmul.f32 0.03125, %v544_v35  ;;  %v547_v21 = vmul.f32 %v545_v36, %v545_v36  ;;  %v552_v33 = vsub.f32 %v1022_v63, %v545_v36  ;;  %v553_v38 = vsub.f32 %v504_v7, %v545_v36 }
 0x29a   :  { %v554_v44 = vsub.f32 %v1020_v61, %v545_v36  ;;  %v555_v45 = vsub.f32 %v512_v6, %v545_v36  ;;  %v418_v63 = vadd.f32 %v407_v41, %v1018_v54  ;;  %v419_v61 = vadd.f32 %v1012_v51, %v411_v62 }
 0x29b   :  { %v548_v48 = vsub.f32 %v546_v43, %v547_v21  ;;  %v644_v21 = vpop.permute.xlu1 %643 }
 0x29c   :  { %v422_v10 = vmax.f32 %v418_v63, 0.0  ;;  %v423_v40 = vmax.f32 %v419_v61, 0.0 }
 0x29d   :  { %v549_v49 = vmax.f32 %v548_v48, 0.0 }
 0x29f   :  { %v550_v42 = vadd.f32 1e-05, %v549_v49 }
 0x2a1   :  { %768 = vrsqrt.f32 %v550_v42 }
 0x2ab   :  { %v769_v59 = vpop.eup %768 }
 0x2ac   :  { %v556_v1 = vmul.f32 %v769_v59, %v552_v33  ;;  %v557_v4 = vmul.f32 %v769_v59, %v553_v38  ;;  %v558_v6 = vmul.f32 %v769_v59, %v554_v44  ;;  %v559_v7 = vmul.f32 %v769_v59, %v555_v45 }
 0x2ae   :  { %v576_v8 = vmul.f32 %v562_v2, %v556_v1  ;;  %v577_v47 = vmul.f32 %v566_v24, %v557_v4  ;;  %v578_v39 = vmul.f32 %v570_v31, %v558_v6  ;;  %v579_v9 = vmul.f32 %v574_v58, %v559_v7 }
 0x2b0   :  { %v597_v3 = vadd.f32 %v586_v37, %v577_v47  ;;  %v598_v54 = vadd.f32 %v590_v55, %v578_v39  ;;  %v596_v11 = vadd.f32 %v582_v56, %v576_v8  ;;  %v599_v53 = vadd.f32 %v594_v57, %v579_v9 }
 0x2b2   :  { %v602_v15 = vadd.f32 %v598_v54, %v423_v40  ;;  %v600_v51 = vadd.f32 %v596_v11, %v421_v46  ;;  %v601_v16 = vadd.f32 %v597_v3, %v422_v10  ;;  %v603_v5 = vadd.f32 %v599_v53, %v424_v12 }
 0x2b4   :  { %v605_v17 = vmax.f32 %v601_v16, 0.0  ;;  %v604_v14 = vmax.f32 %v600_v51, 0.0  ;;  %v606_v2 = vmax.f32 %v602_v15, 0.0  ;;  %v607_v18 = vmax.f32 %v603_v5, 0.0 }
 0x2b6   :  { %v625_v22 = vmul.f32 %v614_v13, %v605_v17  ;;  %v624_v23 = vmul.f32 %v610_v52, %v604_v14  ;;  %v626_v24 = vmul.f32 %v618_v19, %v606_v2  ;;  %v627_v27 = vmul.f32 %v622_v20, %v607_v18 }
 0x2b8   :  { %v629_v25 = vsel %vm239_vm4, %v625_v22, 0.0  ;;  %v628_v26 = vsel %vm239_vm4, %v624_v23, 0.0  ;;  %v631_v29 = vsel %vm239_vm4, %v626_v24, 0.0  ;;  %v633_v31 = vsel %vm239_vm4, %v627_v27, 0.0 }
 0x2b9   :  { %v630_v28 = vadd.f32 %v629_v25, %v628_v26 }
 0x2bb   :  { %v632_v30 = vadd.f32 %v631_v29, %v630_v28 }
 0x2bd   :  { %v634_v32 = vadd.f32 %v633_v31, %v632_v30 }
 0x2bf   :  { %v635_v34 = vrot.slane %v634_v32, 4 }
 0x2c1   :  { %v636_v35 = vadd.f32 %v635_v34, %v634_v32 }
 0x2c3   :  { %v637_v36 = vrot.slane %v636_v35, 2 }
 0x2c5   :  { %v638_v37 = vadd.f32 %v637_v36, %v636_v35 }
 0x2c7   :  { %v639_v43 = vrot.slane %v638_v37, 1 }
 0x2c9   :  { %v640_v33 = vadd.f32 %v639_v43, %v638_v37 }
 0x2cb   :  { %v646_v38 = vadd.f32 %v644_v21, %v640_v33 }
 0x2cd   :  { %648 = vst.msk [vmem:[#allocation3] sm:$0x1] %vm647_vm5, %v646_v38 }
 0x2ce   :  { %781 = shalt.err (!%p778_p4)
}
 0x2cf   :  { %s782_s6 = scalar_lea.hbm %s1065_s5, 16 }
 0x2d0   :  { %p783_p5 = scmp.ne.s32.totalorder %s1065_s5, %s782_s6  ;;  %p786_p6 = scmp.lt.u32.totalorder %s782_s6, %s1065_s5 }
 0x2d2   :  { %p788_p7 = pnand %p786_p6, %p783_p5 }
 0x2d4   :  { %791 = shalt.err (!%p788_p7)
}
 0x2d5   :  { %658 = dma.vmem_to_hbm [thread:$0]  %s656_s26, 16, %s1065_s5, [#allocation4]  }
 0x2d6   :  { %792 = dma.done.wait [#allocation4], 16  }
 0x2d7   :  { %793 = vsyncadd [#allocation4], 4294967280 }
 0x2d8   :  { %662 = vsyncpa [#allocation4], 1 }

</bundles_post_ra>
